<compile_context>
chip_gen: v7x
topology: tpu7x:2x2x1
jax: 0.10.0
libtpu: 0.0.40
codegen_flags: <defaults>
</compile_context>

<pallas_src>
import math
import functools

import jax
import jax.numpy as jnp
from jax.experimental import pallas as pl
from jax.experimental.pallas import tpu as pltpu


# ---------------------------------------------------------------------------
# Kernel bodies
# ---------------------------------------------------------------------------
def _add_pe(x, pe):
    """x + pe, broadcasting pe over the batch axis in the 3-D layout."""
    if x.ndim == 3 and pe.ndim == 2:
        # x: (ts, B, D), pe: (ts, D)  -> sublane broadcast over batch.
        return x + pe[:, None, :]
    return x + pe  # flat layout: both (ts, B*D)


def _pe_add_kernel(x_ref, pe_ref, o_ref):
    """Eval mode: o = x + pe."""
    o_ref[...] = _add_pe(x_ref[...], pe_ref[...])


def _pe_add_dropout_prng_kernel(seed_ref, x_ref, pe_ref, o_ref, *, threshold, scale):
    """Training (TPU PRNG): inverted dropout with an integer-threshold compare.

    threshold = floor(p * 2**32); keep iff bits >= threshold.  The per-tile
    seed is hash-mixed with program_id so tiles draw decorrelated streams.
    """
    y = _add_pe(x_ref[...], pe_ref[...])
    # 0x9E3779B1 (golden-ratio odd constant) as a signed int32; int32 mul wraps.
    mixed = seed_ref[0] ^ (pl.program_id(0) * jnp.int32(-1640531535))
    pltpu.prng_seed(mixed)
    bits = pltpu.prng_random_bits(y.shape)
    if bits.dtype != jnp.uint32:
        bits = pltpu.bitcast(bits, jnp.uint32)
    keep = bits >= jnp.uint32(threshold)
    o_ref[...] = jnp.where(keep, y * jnp.asarray(scale, y.dtype), jnp.zeros_like(y))


def _pe_add_masked_kernel(x_ref, pe_ref, m_ref, o_ref):
    """Portable training path: m already holds bernoulli(1-p)/(1-p) in x.dtype."""
    o_ref[...] = _add_pe(x_ref[...], pe_ref[...]) * m_ref[...]


# ---------------------------------------------------------------------------
# Module-equivalent wrapper
# ---------------------------------------------------------------------------
class PositionalEncoding:
    def __init__(self, d_model, dropout=0.1, max_len=5000):
        self.p = float(dropout)
        self.d_model = int(d_model)
        self.max_len = int(max_len)

        # Deterministic buffer construction, identical to the PyTorch __init__.
        position = jnp.arange(0, max_len, dtype=jnp.float32)[:, None]          # [L, 1]
        div_term = jnp.exp(
            jnp.arange(0, d_model, 2, dtype=jnp.float32)
            * (-math.log(10000.0) / d_model)
        )                                                                        # [D/2]
        pe = jnp.zeros((max_len, d_model), dtype=jnp.float32)
        pe = pe.at[:, 0::2].set(jnp.sin(position * div_term))
        pe = pe.at[:, 1::2].set(jnp.cos(position * div_term))
        self._pe2d = pe                    # [max_len, D]   master (f32) copy
        self.pe = pe[:, None, :]           # [max_len, 1, D]  (PyTorch buffer layout)
        self._pe_cache = {}                # (kind, S, B, dtype) -> prepared pe

    # -- pe buffer, cast (and optionally tiled across batch), cached ----------
    def _pe_for(self, S, B, dtype, *, flatten):
        key = ("flat" if flatten else "bcast", S, B if flatten else 1,
               jnp.dtype(dtype).name)
        pe = self._pe_cache.get(key)
        if pe is None:
            pe = self._pe2d[:S].astype(dtype)          # [S, D]
            if flatten:
                pe = jnp.tile(pe, (1, B))              # [S, B*D] (lane-dense)
            self._pe_cache[key] = pe
        return pe

    # -- tile sizing against PADDED bytes -------------------------------------
    @staticmethod
    def _tile_rows(S, padded_row_bytes, sub):
        # ~2 MiB of PADDED bytes per x/out block.  Worst case (masked fallback)
        # has 4 streams (x, pe, mask, out) double-buffered -> well under the
        # 32 MiB scoped-VMEM budget, safe on v5e/v6e/v7x.  Sweeps plateau at
        # ~85% of HBM roofline around 1-4 MiB tiles, so don't chase bigger.
        target = 2 * 1024 * 1024
        rows = max(1, target // max(1, padded_row_bytes))
        if rows >= S:
            return int(S)
        rows = max(sub, (rows // sub) * sub)   # keep blocks (8,128)-divisible
        return int(min(rows, S))

    def __call__(self, x, *, training=False, seed=0):
        """x: [seq_len, batch, d_model] -> same shape."""
        S, B, D = x.shape
        assert D == self.d_model and S <= self.max_len
        dtype = x.dtype
        itemsize = jnp.dtype(dtype).itemsize
        sub = 32 // itemsize                     # sublanes/vreg: f32->8, bf16->16, i8->32

        # Layout selection (lane/sublane-dense blocks):
        #   3d  : (ts, B, D) x/out blocks, pe (ts, D) broadcast in-kernel.
        #         Zero padding when B % sub == 0 and D % 128 == 0; pe traffic = x/B.
        #   flat: x viewed as [S, B*D]; dense minor dims for tiny B or narrow D,
        #         pe pre-tiled to [S, B*D] (cached).
        use_3d = (D % 128 == 0) and (B % sub == 0)

        if use_3d:
            padded_row_bytes = B * D * itemsize                 # no padding
            ts = self._tile_rows(S, padded_row_bytes, sub)
            grid = (pl.cdiv(S, ts),)
            x_in = x
            out_dims = (S, B, D)
            x_block, pe_block = (ts, B, D), (ts, D)
            x_map = lambda i: (i, 0, 0)
            pe_map = lambda i: (i, 0)
            pe_arr = self._pe_for(S, B, dtype, flatten=False)
        else:
            W = B * D
            padded_row_bytes = pl.cdiv(W, 128) * 128 * itemsize  # lane-padded
            ts = self._tile_rows(S, padded_row_bytes, sub)
            grid = (pl.cdiv(S, ts),)
            x_in = x.reshape(S, W)                               # free (contiguous)
            out_dims = (S, W)
            x_block, pe_block = (ts, W), (ts, W)
            x_map = lambda i: (i, 0)
            pe_map = lambda i: (i, 0)
            pe_arr = self._pe_for(S, B, dtype, flatten=True)

        # Scalar-prefetch variants of the index maps (seed ref is positional).
        x_map_sp = lambda i, seed_ref: x_map(i)
        pe_map_sp = lambda i, seed_ref: pe_map(i)

        out_shape = jax.ShapeDtypeStruct(out_dims, dtype)
        n_elem = S * B * D
        cost = pl.CostEstimate(
            flops=2 * n_elem,
            transcendentals=0,
            bytes_accessed=2 * n_elem * itemsize + pe_arr.size * itemsize,
        )
        compiler_params = pltpu.CompilerParams(
            dimension_semantics=("parallel",),        # megacore split where available
            vmem_limit_bytes=32 * 1024 * 1024,        # explicit, v7x-safe
        )

        def _restore(out):
            return out if use_3d else out.reshape(S, B, D)

        # ----- eval mode (dropout = identity) --------------------------------
        if (not training) or self.p == 0.0:
            out = pl.pallas_call(
                _pe_add_kernel,
                out_shape=out_shape,
                grid=grid,
                in_specs=[pl.BlockSpec(x_block, x_map),
                          pl.BlockSpec(pe_block, pe_map)],
                out_specs=pl.BlockSpec(x_block, x_map),
                compiler_params=compiler_params,
                cost_estimate=cost,
            )(x_in, pe_arr)
            return _restore(out)

        # ----- training mode --------------------------------------------------
        if self.p >= 1.0:           # avoid 1/(1-p) division by zero
            return jnp.zeros_like(x)

        scale = 1.0 / (1.0 - self.p)

        if jax.default_backend() == "tpu":
            # On-chip PRNG; integer threshold avoids per-element u32->f32
            # converts; seed arrives via scalar prefetch (SMEM).
            threshold = min(int(self.p * 4294967296.0), 4294967295)
            seed_arr = jnp.asarray([seed], dtype=jnp.int32)
            out = pl.pallas_call(
                functools.partial(_pe_add_dropout_prng_kernel,
                                  threshold=threshold, scale=scale),
                out_shape=out_shape,
                grid_spec=pltpu.PrefetchScalarGridSpec(
                    num_scalar_prefetch=1,
                    grid=grid,
                    in_specs=[pl.BlockSpec(x_block, x_map_sp),
                              pl.BlockSpec(pe_block, pe_map_sp)],
                    out_specs=pl.BlockSpec(x_block, x_map_sp),
                ),
                compiler_params=compiler_params,
                cost_estimate=cost,
            )(seed_arr, x_in, pe_arr)
            return _restore(out)

        # TODO(synk): pltpu.prng_* has no lowering off-TPU (CPU / interpret
        # mode); fall back to a host-generated, pre-scaled keep mask fused into
        # the same add kernel.
        keep = jax.random.bernoulli(jax.random.PRNGKey(seed), 1.0 - self.p, out_dims)
        mask = keep.astype(dtype) * jnp.asarray(scale, dtype)
        out = pl.pallas_call(
            _pe_add_masked_kernel,
            out_shape=out_shape,
            grid=grid,
            in_specs=[pl.BlockSpec(x_block, x_map),
                      pl.BlockSpec(pe_block, pe_map),
                      pl.BlockSpec(x_block, x_map)],
            out_specs=pl.BlockSpec(x_block, x_map),
            compiler_params=compiler_params,
            cost_estimate=cost,
        )(x_in, pe_arr, mask)
        return _restore(out)


# ---------------------------------------------------------------------------
def _check_shapes(module, x, p, label):
    S, B, D = x.shape
    ref = x + module.pe[:S].astype(x.dtype)

    out = jax.block_until_ready(module(x, training=False))
    assert out.shape == (S, B, D)
    assert jnp.allclose(out, ref, atol=1e-6), f"{label}: eval-mode mismatch"

    out_train = jax.block_until_ready(module(x, training=True, seed=123))
    assert out_train.shape == (S, B, D)
    scaled = ref / (1.0 - p)
    ok = jnp.isclose(out_train, 0.0, atol=1e-6) | jnp.isclose(
        out_train, scaled, atol=1e-4, rtol=1e-4)
    assert bool(jnp.all(ok)), f"{label}: training-mode dropout values out of range"


if __name__ == "__main__":
    p = 0.1
    key = jax.random.PRNGKey(0)
    k_small, k_dense = jax.random.split(key)

    # Small / odd shapes -> "flat" lane-dense path (B*D = 64 lanes).
    module_small = PositionalEncoding(d_model=32, dropout=p, max_len=5000)
    x_small = jax.random.normal(k_small, (8, 2, 32), dtype=jnp.float32)
    _check_shapes(module_small, x_small, p, "flat path")

    # Transformer-like shapes (D % 128 == 0, B % 8 == 0) -> zero-padding 3-D path.
    module_dense = PositionalEncoding(d_model=128, dropout=p, max_len=5000)
    x_dense = jax.random.normal(k_dense, (16, 8, 128), dtype=jnp.float32)
    _check_shapes(module_dense, x_dense, p, "3d path")

    print("KERNEL_OK")
</pallas_src>

<mosaic_0001>
module attributes {stable_mosaic.version = 11 : i64} {
  func.func @_pe_add_kernel(%arg0: i32, %arg1: memref<8x64xf32, #tpu.memory_space<vmem>>, %arg2: memref<8x64xf32, #tpu.memory_space<vmem>>, %arg3: memref<8x64xf32, #tpu.memory_space<vmem>>) attributes {dimension_semantics = [#tpu.dimension_semantics<parallel>], iteration_bounds = array<i64: 1>, scalar_prefetch = 0 : i64, scratch_operands = 0 : i64, tpu.core_type = #tpu.core_type<tc>, window_params = [{transform_indices = @transform_0, window_bounds = array<i64: 8, 64>}, {transform_indices = @transform_1, window_bounds = array<i64: 8, 64>}, {transform_indices = @transform_2, window_bounds = array<i64: 8, 64>}]} {
    %c0 = arith.constant 0 : index
    %c0_0 = arith.constant 0 : index
    %0 = vector.load %arg1[%c0, %c0_0] : memref<8x64xf32, #tpu.memory_space<vmem>>, vector<8x64xf32>
    %c0_1 = arith.constant 0 : index
    %c0_2 = arith.constant 0 : index
    %1 = vector.load %arg2[%c0_1, %c0_2] : memref<8x64xf32, #tpu.memory_space<vmem>>, vector<8x64xf32>
    %2 = arith.addf %0, %1 : vector<8x64xf32>
    %c0_3 = arith.constant 0 : index
    %c0_4 = arith.constant 0 : index
    %3 = vector.load %arg3[%c0_3, %c0_4] : memref<8x64xf32, #tpu.memory_space<vmem>>, vector<8x64xf32>
    tpu.vector_store %arg3[%c0_3, %c0_4], %2 {strides = array<i32>} : memref<8x64xf32, #tpu.memory_space<vmem>>, vector<8x64xf32>,
    return
  }
  func.func @transform_0(%arg0: i32) -> (i32, i32) {
    %c0_i32 = arith.constant 0 : i32
    %c0_i32_0 = arith.constant 0 : i32
    return %arg0, %c0_i32 : i32, i32
  }
  func.func @transform_1(%arg0: i32) -> (i32, i32) {
    %c0_i32 = arith.constant 0 : i32
    %c0_i32_0 = arith.constant 0 : i32
    return %arg0, %c0_i32 : i32, i32
  }
  func.func @transform_2(%arg0: i32) -> (i32, i32) {
    %c0_i32 = arith.constant 0 : i32
    %c0_i32_0 = arith.constant 0 : i32
    return %arg0, %c0_i32 : i32, i32
  }
}

</mosaic_0001>

<bundles_post_ra>
// kernel: tpu_custom_call.1
= control target key start
LH: loop header
LB: loop body
LE: loop exit
PB: predicated region body
PF: predicated region fallthrough
CT: control target
= control target key end

     0   :  { %7 = vsyncpa [#allocation3], 0  ;;  %s186_s0 = inlined_call_operand.hbm [shape: f32[8,64], index: 0, kind: input, shape index: {}]   ;;  %s187_s1 = inlined_call_operand.hbm [shape: f32[8,64], index: 1, kind: input, shape index: {}]   ;;  %s188_s2 = inlined_call_operand.hbm [shape: f32[8,64], index: 2, kind: output, shape index: {}]  }
   0x1   :  { %8 = vsyncpa [#allocation6], 0 }
   0x2   :  { %9 = vsyncpa [#allocation4], 0  ;;  %s132_s9 = smov [#allocation2]   ;;  %s133_s11 = smov [#allocation5]  }
   0x3   :  { %s16_s10 = sshll.u32 %s132_s9, 4  ;;  %s26_s12 = sshll.u32 %s133_s11, 4  ;;  %s17_s10 = int_to_ptr.vmem [resolvable:$true] %s16_s10  ;;  %s27_s12 = int_to_ptr.vmem [resolvable:$true] %s26_s12 }
   0x4   :  { %s60_s15 = scalar_lea.hbm %s186_s0, 128 }
   0x5   :  { %p61_p0 = scmp.ne.s32.totalorder %s186_s0, %s60_s15  ;;  %p64_p1 = scmp.lt.u32.totalorder %s60_s15, %s186_s0 }
   0x7   :  { %p66_p2 = pnand %p64_p1, %p61_p0 }
   0x9   :  { %69 = shalt.err (!%p66_p2)
}
   0xa   :  { %s70_s20 = scalar_lea.vmem %s17_s10, 128  ;;  %p75_p4 = scmp.lt.s32.totalorder %s17_s10, %s17_s10 }
   0xb   :  { %p71_p3 = scmp.ne.s32.totalorder %s17_s10, %s70_s20  ;;  %p76_p5 = scmp.lt.s32.totalorder %s70_s20, %s70_s20 }
   0xd   :  { %p77_p6 = por %p76_p5, %p75_p4 }
   0xf   :  { %p78_p7 = pnand %p77_p6, %p71_p3 }
  0x11   :  { %81 = shalt.err (!%p78_p7)
}
  0x12   :  { %19 = dma.hbm_to_vmem [thread:$0]  %s186_s0, 128, %s17_s10, [#allocation3]  }
  0x13   :  { %s82_s25 = scalar_lea.hbm %s187_s1, 128 }
  0x14   :  { %p83_p8 = scmp.ne.s32.totalorder %s187_s1, %s82_s25  ;;  %p86_p9 = scmp.lt.u32.totalorder %s82_s25, %s187_s1 }
  0x16   :  { %p88_p10 = pnand %p86_p9, %p83_p8 }
  0x18   :  { %91 = shalt.err (!%p88_p10)
}
  0x19   :  { %s92_s30 = scalar_lea.vmem %s27_s12, 128  ;;  %p97_p12 = scmp.lt.s32.totalorder %s27_s12, %s27_s12 }
  0x1a   :  { %p93_p11 = scmp.ne.s32.totalorder %s27_s12, %s92_s30  ;;  %p98_p13 = scmp.lt.s32.totalorder %s92_s30, %s92_s30 }
  0x1c   :  { %p99_p0 = por %p98_p13, %p97_p12 }
  0x1e   :  { %p100_p1 = pnand %p99_p0, %p93_p11 }
  0x20   :  { %103 = shalt.err (!%p100_p1)
}
  0x21   :  { %29 = dma.hbm_to_vmem [thread:$0]  %s187_s1, 128, %s27_s12, [#allocation6]  }
  0x22   :  { %126 = dma.done.wait [#allocation3], 128  }
  0x23   :  { %127 = vsyncadd [#allocation3], 4294967168 }
  0x24   :  { %128 = dma.done.wait [#allocation6], 128  }
  0x25   :  { %129 = vsyncadd [#allocation6], 4294967168  ;;  %s134_s4 = smov [#allocation7]   ;;  %v36_v0 = vld [vmem:[#allocation2] sm:$0xff]  ;;  %v37_v1 = vld [vmem:[#allocation5] sm:$0xff]  ;;  %vm39_vm0 = vcmask 523264  }
  0x26   :  { %s47_s5 = sshll.u32 %s134_s4, 4  ;;  %v38_v2 = vadd.f32 %v37_v1, %v36_v0  ;;  %s48_s5 = int_to_ptr.vmem [resolvable:$true] %s47_s5 }
  0x27   :  { %s104_s6 = scalar_lea.vmem %s48_s5, 128  ;;  %p109_p3 = scmp.lt.s32.totalorder %s48_s5, %s48_s5 }
  0x28   :  { %40 = vst.msk [vmem:[#allocation7] sm:$0xff] %vm39_vm0, %v38_v2  ;;  %p105_p2 = scmp.ne.s32.totalorder %s48_s5, %s104_s6  ;;  %p110_p4 = scmp.lt.s32.totalorder %s104_s6, %s104_s6 }
  0x2a   :  { %p111_p5 = por %p110_p4, %p109_p3 }
  0x2c   :  { %p112_p6 = pnand %p111_p5, %p105_p2 }
  0x2e   :  { %115 = shalt.err (!%p112_p6)
}
  0x2f   :  { %s116_s8 = scalar_lea.hbm %s188_s2, 128 }
  0x30   :  { %p117_p7 = scmp.ne.s32.totalorder %s188_s2, %s116_s8  ;;  %p120_p8 = scmp.lt.u32.totalorder %s116_s8, %s188_s2 }
  0x32   :  { %p122_p9 = pnand %p120_p8, %p117_p7 }
  0x34   :  { %125 = shalt.err (!%p122_p9)
}
  0x35   :  { %50 = dma.vmem_to_hbm [thread:$0]  %s48_s5, 128, %s188_s2, [#allocation4]  }
  0x36   :  { %130 = dma.done.wait [#allocation4], 128  }
  0x37   :  { %131 = vsyncadd [#allocation4], 4294967168 }
  0x38   :  { %54 = vsyncpa [#allocation3], 1 }
  0x39   :  { %55 = vsyncpa [#allocation6], 1 }
  0x3a   :  { %56 = vsyncpa [#allocation4], 1 }

</bundles_post_ra>
